<compile_context>
chip_gen: v6e
topology: v6e:2x2x1
jax: 0.10.0
libtpu: 0.0.40
codegen_flags: <defaults>
</compile_context>

<pallas_src>
import functools

import jax
import jax.numpy as jnp
from jax.experimental import pallas as pl
from jax.experimental.pallas import tpu as pltpu


def _round_up(a: int, b: int) -> int:
    return (a + b - 1) // b * b


# ---------------------------------------------------------------------------
# Kernels
# ---------------------------------------------------------------------------
def _ffn_step(x_ref, w13_ref, w2_ref, acc_ref):
    """One hidden-slab step: acc += (silu(x@w1s) * (x@w3s)) @ w2s."""
    x = x_ref[...]                       # (tm, dim), compute dtype
    th = w2_ref.shape[0]                 # hidden tile (static)
    # Fused gate/up projection: (tm, dim) @ (dim, 2*th) -> (tm, 2*th), f32 acc.
    h13 = jnp.dot(x, w13_ref[...], preferred_element_type=jnp.float32)
    h1 = h13[:, :th]
    h3 = h13[:, th:]
    g = (h1 * jax.nn.sigmoid(h1)) * h3   # SwiGLU gate, f32
    # Down-projection partial: (tm, th) @ (th, dim) -> (tm, dim), f32 acc.
    acc_ref[...] += jnp.dot(g.astype(x.dtype), w2_ref[...],
                            preferred_element_type=jnp.float32)


def _ffn_kernel_f32_out(x_ref, w13_ref, w2_ref, o_ref):
    """f32 output: accumulate directly into the resident output block."""
    @pl.when(pl.program_id(1) == 0)
    def _init():
        o_ref[...] = jnp.zeros_like(o_ref)

    _ffn_step(x_ref, w13_ref, w2_ref, o_ref)


def _ffn_kernel_scratch(x_ref, w13_ref, w2_ref, o_ref, acc_ref):
    """Non-f32 output: accumulate in an f32 VMEM scratch, cast at the end."""
    h = pl.program_id(1)

    @pl.when(h == 0)
    def _init():
        acc_ref[...] = jnp.zeros_like(acc_ref)

    _ffn_step(x_ref, w13_ref, w2_ref, acc_ref)

    @pl.when(h == pl.num_programs(1) - 1)
    def _finalize():
        o_ref[...] = acc_ref[...].astype(o_ref.dtype)


# ---------------------------------------------------------------------------
# Tiling / hardware heuristics
# ---------------------------------------------------------------------------
def _vmem_budget_bytes() -> int:
    cap = None
    try:
        cap = getattr(pltpu.get_tpu_info(), "vmem_capacity_bytes", None)
    except Exception:
        cap = None
    if not cap:
        cap = 64 * 1024 * 1024            # conservative (v7x per-core VMEM)
    # ~20% headroom for compiler-internal scratch / spills; never ask for more
    # than ~110 MiB even on 128 MiB parts (v5e/v6e).
    return min(int(cap) * 4 // 5, 110 * 1024 * 1024)


def _num_tensorcores() -> int:
    try:
        kind = jax.devices()[0].device_kind.lower()
        if "v7" in kind:                  # v7x: 2 TensorCores per chip
            return 2
    except Exception:
        pass
    return 1


def _pick_th(hidden: int, th_req: int) -> int:
    """Largest multiple of 128 that divides hidden and is <= th_req."""
    th_req = max(th_req, 128)
    best = None
    d = 128
    while d <= hidden:
        if hidden % d == 0 and d <= th_req:
            best = d
        d += 128
    return best if best is not None else hidden   # tiny/odd hidden: one slab


def _estimate_vmem(tm, th, dim, cbytes, obytes, use_scratch) -> int:
    x_b = 2 * tm * dim * cbytes               # double-buffered activations
    w13_b = 2 * dim * (2 * th) * cbytes       # double-buffered fused w1|w3 slab
    w2_b = 2 * th * dim * cbytes              # double-buffered w2 slab
    out_b = 2 * tm * dim * obytes             # output block
    acc_b = tm * dim * 4 if use_scratch else 0
    gate_b = 3 * tm * th * 4                  # h13 + gate f32 intermediates
    return x_b + w13_b + w2_b + out_b + acc_b + gate_b


def _pick_tiles(M, dim, hidden, cbytes, obytes, use_scratch, budget,
                tm_req, th_req, cores):
    M8 = _round_up(max(M, 1), 8)
    th = _pick_th(hidden, th_req)
    # Shrink th first if the weight slabs alone overflow the budget.
    while (th % 128 == 0 and th > 128 and
           _estimate_vmem(8, th, dim, cbytes, obytes, use_scratch) > budget):
        th = _pick_th(hidden, th - 128)
    tm = min(_round_up(tm_req, 8), M8)
    if cores > 1:
        # Ensure the 'parallel' row axis has at least one tile per TensorCore.
        tm = min(tm, max(8, _round_up(-(-M8 // cores), 8)))
    while tm > 8 and _estimate_vmem(tm, th, dim, cbytes, obytes,
                                    use_scratch) > budget:
        tm = max(8, _round_up(tm // 2, 8))
    return tm, th


# ---------------------------------------------------------------------------
# Wrapper
# ---------------------------------------------------------------------------
@functools.partial(jax.jit, static_argnames=("tm", "th", "compute_dtype"))
def feed_forward(x, w1, w2, w3, *, tm=None, th=None,
                 compute_dtype=jnp.bfloat16):
    """SwiGLU FFN: w2(silu(w1 x) * w3 x); dropout is identity (eval / p=0).

    Args:
      x:  [batch, seq, dim]
      w1: [hidden, dim]   (PyTorch nn.Linear layout: (out, in))
      w2: [dim, hidden]
      w3: [hidden, dim]
      tm: requested row tile of the flattened batch*seq axis (None -> auto).
      th: requested hidden tile (None -> auto; 128-aligned divisor of hidden).
      compute_dtype: matmul dtype (bf16 recommended; accumulation is f32).
    Returns:
      [batch, seq, dim] in x.dtype.
    """
    batch, seq, dim = x.shape
    hidden = w1.shape[0]
    assert w1.shape == (hidden, dim)
    assert w3.shape == (hidden, dim)
    assert w2.shape == (dim, hidden)

    out_dtype = x.dtype
    use_scratch = out_dtype != jnp.float32
    cbytes = jnp.dtype(compute_dtype).itemsize
    obytes = jnp.dtype(out_dtype).itemsize

    M = batch * seq
    budget = _vmem_budget_bytes()
    cores = _num_tensorcores()
    tm_req = 1024 if tm is None else tm
    th_req = 512 if th is None else th
    tm_eff, th_eff = _pick_tiles(M, dim, hidden, cbytes, obytes, use_scratch,
                                 budget, tm_req, th_req, cores)

    # ---- one-time weight re-layout into MXU-friendly (k, n) form ----------
    # (In a real model these would be stored pre-transformed; here the
    #  transform runs under jit alongside the kernel.)
    nhb = hidden // th_eff
    w1t = jnp.transpose(w1).reshape(dim, nhb, th_eff)
    w3t = jnp.transpose(w3).reshape(dim, nhb, th_eff)
    w13 = jnp.transpose(jnp.concatenate([w1t, w3t], axis=-1), (1, 0, 2))
    w13 = w13.astype(compute_dtype)                   # (nhb, dim, 2*th)
    w2t = jnp.transpose(w2).astype(compute_dtype)     # (hidden, dim)

    # ---- activations: flatten + pad rows to a tile multiple ---------------
    x2d = x.reshape(M, dim).astype(compute_dtype)
    M_pad = _round_up(M, tm_eff)
    if M_pad != M:
        x2d = jnp.pad(x2d, ((0, M_pad - M), (0, 0)))

    grid = (M_pad // tm_eff, nhb)

    in_specs = [
        pl.BlockSpec((tm_eff, dim), lambda i, h: (i, 0)),               # x rows
        pl.BlockSpec((None, dim, 2 * th_eff), lambda i, h: (h, 0, 0)),  # w1|w3
        pl.BlockSpec((th_eff, dim), lambda i, h: (h, 0)),               # w2
        # If weight DMA is still exposed after sizing tm (check xprof), add
        # pipeline_mode=pl.Buffered(3) to the two weight specs (skip on v7x
        # when it does not fit the 64 MiB budget).
    ]
    out_spec = pl.BlockSpec((tm_eff, dim), lambda i, h: (i, 0))

    if use_scratch:
        kernel = _ffn_kernel_scratch
        scratch = [pltpu.VMEM((tm_eff, dim), jnp.float32)]
    else:
        kernel = _ffn_kernel_f32_out
        scratch = []

    out2d = pl.pallas_call(
        kernel,
        out_shape=jax.ShapeDtypeStruct((M_pad, dim), out_dtype),
        grid_spec=pltpu.PrefetchScalarGridSpec(
            num_scalar_prefetch=0,
            grid=grid,
            in_specs=in_specs,
            out_specs=out_spec,
            scratch_shapes=scratch,
        ),
        compiler_params=pltpu.CompilerParams(
            dimension_semantics=("parallel", "arbitrary"),
            vmem_limit_bytes=budget,
        ),
    )(x2d, w13, w2t)

    if M_pad != M:
        out2d = out2d[:M]
    return out2d.reshape(batch, seq, dim)


# ---------------------------------------------------------------------------
# Reference + demo
# ---------------------------------------------------------------------------
def _reference(x, w1, w2, w3):
    h1 = jnp.einsum("bsd,hd->bsh", x, w1)
    h3 = jnp.einsum("bsd,hd->bsh", x, w3)
    h = (h1 * jax.nn.sigmoid(h1)) * h3
    return jnp.einsum("bsh,dh->bsd", h, w2)


if __name__ == "__main__":
    # Config (mirrors LMConfig hidden_dim derivation):
    # dim=128, multiple_of=128 -> hidden = 128 * ceil(int(2*4*128/3)/128) = 384
    batch, seq, dim, multiple_of = 2, 8, 128, 128
    hidden = 4 * dim
    hidden = int(2 * hidden / 3)
    hidden = multiple_of * ((hidden + multiple_of - 1) // multiple_of)

    key = jax.random.PRNGKey(0)
    kx, k1, k2, k3 = jax.random.split(key, 4)
    x = jax.random.normal(kx, (batch, seq, dim), dtype=jnp.float32)
    # nn.Linear(in, out, bias=False).weight has shape (out, in)
    w1 = jax.random.normal(k1, (hidden, dim), dtype=jnp.float32) * 0.02
    w2 = jax.random.normal(k2, (dim, hidden), dtype=jnp.float32) * 0.02
    w3 = jax.random.normal(k3, (hidden, dim), dtype=jnp.float32) * 0.02

    ref = _reference(x, w1, w2, w3)

    # f32 I/O (bf16 matmuls, direct f32 output accumulation); th=128 -> three
    # hidden slabs, exercising the accumulate-over-hidden path.
    out = feed_forward(x, w1, w2, w3, th=128)
    jax.block_until_ready(out)
    assert out.shape == (batch, seq, dim)
    assert out.dtype == jnp.float32
    assert jnp.allclose(out, ref, atol=3e-2, rtol=3e-2), "f32 mismatch vs reference"

    # bf16 I/O (f32 VMEM scratch accumulator path).
    bf = jnp.bfloat16
    out_bf = feed_forward(x.astype(bf), w1.astype(bf), w2.astype(bf),
                          w3.astype(bf), th=128)
    jax.block_until_ready(out_bf)
    assert out_bf.dtype == bf
    assert jnp.allclose(out_bf.astype(jnp.float32), ref, atol=5e-2, rtol=5e-2), \
        "bf16 mismatch vs reference"

    print("KERNEL_OK")
</pallas_src>

<mosaic_0001>
module attributes {stable_mosaic.version = 11 : i64} {
  func.func @_ffn_kernel_f32_out(%arg0: i32, %arg1: i32, %arg2: memref<16x128xbf16, #tpu.memory_space<vmem>>, %arg3: memref<1x128x256xbf16, #tpu.memory_space<vmem>>, %arg4: memref<128x128xbf16, #tpu.memory_space<vmem>>, %arg5: memref<16x128xf32, #tpu.memory_space<vmem>>) attributes {dimension_semantics = [#tpu.dimension_semantics<parallel>, #tpu.dimension_semantics<arbitrary>], iteration_bounds = array<i64: 1, 3>, scalar_prefetch = 0 : i64, scratch_operands = 0 : i64, tpu.core_type = #tpu.core_type<tc>, window_params = [{transform_indices = @transform_0, window_bounds = array<i64: 16, 128>}, {transform_indices = @transform_1, window_bounds = array<i64: 1, 128, 256>}, {transform_indices = @transform_2, window_bounds = array<i64: 128, 128>}, {transform_indices = @transform_3, window_bounds = array<i64: 16, 128>}]} {
    %c0_i32 = arith.constant 0 : i32
    %0 = arith.cmpi eq, %arg1, %c0_i32 : i32
    %1 = arith.extui %0 : i1 to i32
    %c0_i32_0 = arith.constant 0 : i32
    %2 = arith.cmpi ne, %1, %c0_i32_0 : i32
    scf.if %2 {
      %cst_13 = arith.constant 0.000000e+00 : f32
      %22 = vector.broadcast %cst_13 : f32 to vector<16x128xf32>
      %c0_14 = arith.constant 0 : index
      %c0_15 = arith.constant 0 : index
      %23 = vector.load %arg5[%c0_14, %c0_15] : memref<16x128xf32, #tpu.memory_space<vmem>>, vector<16x128xf32>
      tpu.vector_store %arg5[%c0_14, %c0_15], %22 {strides = array<i32>} : memref<16x128xf32, #tpu.memory_space<vmem>>, vector<16x128xf32>,
    } else {
    }
    %c0 = arith.constant 0 : index
    %c0_1 = arith.constant 0 : index
    %3 = vector.load %arg2[%c0, %c0_1] : memref<16x128xbf16, #tpu.memory_space<vmem>>, vector<16x128xbf16>
    %c0_2 = arith.constant 0 : index
    %c0_3 = arith.constant 0 : index
    %c0_4 = arith.constant 0 : index
    %4 = vector.load %arg3[%c0_2, %c0_3, %c0_4] : memref<1x128x256xbf16, #tpu.memory_space<vmem>>, vector<1x128x256xbf16>
    %5 = vector.shape_cast %4 : vector<1x128x256xbf16> to vector<128x256xbf16>
    %cst = arith.constant dense<0.000000e+00> : vector<16x256xf32>
    %6 = tpu.matmul %3, %5, %cst {dimension_numbers = #tpu.dot_dimension_numbers<[1], [0], [0], [1], [0, 0, 1, 1], [], []>} : vector<16x128xbf16>, vector<128x256xbf16>, vector<16x256xf32> -> vector<16x256xf32>
    %7 = vector.extract_strided_slice %6 {offsets = [0, 0], sizes = [16, 128], strides = [1, 1]} : vector<16x256xf32> to vector<16x128xf32>
    %8 = vector.extract_strided_slice %6 {offsets = [0, 128], sizes = [16, 128], strides = [1, 1]} : vector<16x256xf32> to vector<16x128xf32>
    %9 = arith.negf %7 : vector<16x128xf32>
    %10 = math.exp %9 : vector<16x128xf32>
    %cst_5 = arith.constant 1.000000e+00 : f32
    %11 = vector.broadcast %cst_5 : f32 to vector<16x128xf32>
    %12 = arith.addf %11, %10 : vector<16x128xf32>
    %13 = arith.divf %11, %12 : vector<16x128xf32>
    %14 = arith.mulf %7, %13 : vector<16x128xf32>
    %15 = arith.mulf %14, %8 : vector<16x128xf32>
    %c0_6 = arith.constant 0 : index
    %c0_7 = arith.constant 0 : index
    %16 = vector.load %arg5[%c0_6, %c0_7] : memref<16x128xf32, #tpu.memory_space<vmem>>, vector<16x128xf32>
    %17 = arith.truncf %15 : vector<16x128xf32> to vector<16x128xbf16>
    %c0_8 = arith.constant 0 : index
    %c0_9 = arith.constant 0 : index
    %18 = vector.load %arg4[%c0_8, %c0_9] : memref<128x128xbf16, #tpu.memory_space<vmem>>, vector<128x128xbf16>
    %cst_10 = arith.constant dense<0.000000e+00> : vector<16x128xf32>
    %19 = tpu.matmul %17, %18, %cst_10 {dimension_numbers = #tpu.dot_dimension_numbers<[1], [0], [0], [1], [0, 0, 1, 1], [], []>} : vector<16x128xbf16>, vector<128x128xbf16>, vector<16x128xf32> -> vector<16x128xf32>
    %20 = arith.addf %16, %19 : vector<16x128xf32>
    %c0_11 = arith.constant 0 : index
    %c0_12 = arith.constant 0 : index
    %21 = vector.load %arg5[%c0_11, %c0_12] : memref<16x128xf32, #tpu.memory_space<vmem>>, vector<16x128xf32>
    tpu.vector_store %arg5[%c0_11, %c0_12], %20 {strides = array<i32>} : memref<16x128xf32, #tpu.memory_space<vmem>>, vector<16x128xf32>,
    return
  }
  func.func @transform_0(%arg0: i32, %arg1: i32) -> (i32, i32) {
    %c0_i32 = arith.constant 0 : i32
    %c0_i32_0 = arith.constant 0 : i32
    return %arg0, %c0_i32 : i32, i32
  }
  func.func @transform_1(%arg0: i32, %arg1: i32) -> (i32, i32, i32) {
    %c0_i32 = arith.constant 0 : i32
    %c0_i32_0 = arith.constant 0 : i32
    %c0_i32_1 = arith.constant 0 : i32
    return %arg1, %c0_i32, %c0_i32_0 : i32, i32, i32
  }
  func.func @transform_2(%arg0: i32, %arg1: i32) -> (i32, i32) {
    %c0_i32 = arith.constant 0 : i32
    %c0_i32_0 = arith.constant 0 : i32
    return %arg1, %c0_i32 : i32, i32
  }
  func.func @transform_3(%arg0: i32, %arg1: i32) -> (i32, i32) {
    %c0_i32 = arith.constant 0 : i32
    %c0_i32_0 = arith.constant 0 : i32
    return %arg0, %c0_i32 : i32, i32
  }
}

</mosaic_0001>

<bundles_post_ra>
// kernel: feed_forward.1
= control target key start
LH: loop header
LB: loop body
LE: loop exit
PB: predicated region body
PF: predicated region fallthrough
CT: control target
= control target key end

     0   :  { %8 = vsyncpa [#allocation3], 0  ;;  %s818_s12 = smov 0   ;;  %s820_s13 = smov 0   ;;  %s900_s0 = inlined_call_operand.vmem [shape: bf16[16,128], index: 0, kind: input, shape index: {}]   ;;  %s901_s1 = inlined_call_operand.vmem [shape: bf16[3,128,256], index: 1, kind: input, shape index: {}]   ;;  %s902_s2 = inlined_call_operand.vmem [shape: bf16[384,128], index: 2, kind: input, shape index: {}]   ;;  %s903_s3 = inlined_call_operand.hbm [shape: f32[16,128], index: 3, kind: output, shape index: {}]  }
   0x1   :  { %s822_s14 = smov 0  }
   0x2 LB: > { %s590_s15 = sadd.s32 4294967295, %s789_s14   ;;  %s23_s16 = sadd.s32 1, %s785_s13  ;;  %s789_s14 = sphi %s822_s14, %s14_s14   ;;  %s785_s13 = sphi %s820_s13, %s906_s13   ;;  %s781_s12 = sphi %s818_s12, %s905_s12  }
   0x3   : > { %p24_p0 = scmp.ge.s32.totalorder %s23_s16, 3  ;;  %p594_p1 = scmp.ge.s32.totalorder %s789_s14, 1 }
   0x4   : > { %p172_p2 = scmp.lt.s32.totalorder %s789_s14, 4 }
   0x5   : > { %s908_s16 = smov (%p24_p0, %s23_s16), 0 }
   0x6   : > { %p173_p3 = pnand %p594_p1, %p172_p2 }
   0x7   : > { %p207_p4 = scmp.lt.s32.totalorder (!%p173_p3), %s781_s12, 2  ;;  %s597_s17 = sshll.u32 (!%p173_p3), %s781_s12, 4 }
   0x8   : > { %176 = sbr.rel (%p173_p3) target bundleno = 494 (0x1ee), region = 32  ;;  %p213_p5 = scmp.lt.s32.totalorder (!%p173_p3), %s597_s17, 47 }
   0x9   : > { %p599_p6 = scmp.ne.s32.totalorder (!%p173_p3), %s781_s12, 0 }
   0xd   : > { %s208_s18 = scalar_select %p207_p4, %s781_s12, 2 }
   0xe   : > { %s910_s17 = smov (!%p213_p5, %s597_s17), 47  ;;  %223 = sbr.rel (%p599_p6) target bundleno = 21 (0x15), region = 36 }
   0xf   : > { %s631_s19 = sshll.u32 %s208_s18, 7  ;;  %s598_s23 = sshll.u32 %s910_s17, 2 }
  0x10   : > { %s840_s22 = scalar_lea.vmem %s901_s1, %s631_s19  ;;  %s845_s26 = scalar_lea.vmem %s902_s2, %s598_s23 }
  0x13   : > { %v791_v0 = vmov 0.0  }
  0x14   : > { %224 = vst [vmem:[#allocation2] sm:$0xff] %v791_v0  ;;  %225 = vst [vmem:[#allocation2 + $0x8] sm:$0xff] %v791_v0 }
  0x15 PF: > { %v698_v1 = vld [vmem:[%s840_s22 + $0x74] ss:$8 sps:$4 sm:$0xff]   ;;  %v700_v2 = vld [vmem:[%s840_s22 + $0x70] ss:$8 sps:$4 sm:$0xff]   ;;  %v792_v3 = vmov 0   ;;  %v722_v18 = vld [vmem:[%s900_s0] sm:$0xff]  }
  0x16   : > { %362 = vmatprep.mubr.bf16.mxu0 %v792_v3  ;;  %330 = vmatprep.subr.bf16.mxu0 %v698_v1  ;;  %v701_v4 = vld [vmem:[%s840_s22 + $0x64] ss:$8 sps:$4 sm:$0xff]   ;;  %v703_v5 = vld [vmem:[%s840_s22 + $0x60] ss:$8 sps:$4 sm:$0xff]   ;;  %v704_v6 = vld [vmem:[%s840_s22 + $0x54] ss:$8 sps:$4 sm:$0xff]  }
  0x17   : > { %331 = vmatpush1.bf16.msra.mxu0 %v700_v2  ;;  %v706_v7 = vld [vmem:[%s840_s22 + $0x50] ss:$8 sps:$4 sm:$0xff]   ;;  %v707_v8 = vld [vmem:[%s840_s22 + $0x44] ss:$8 sps:$4 sm:$0xff]   ;;  %v709_v9 = vld [vmem:[%s840_s22 + $0x40] ss:$8 sps:$4 sm:$0xff]  }
  0x18   : > { %332 = vmatprep.subr.bf16.mxu0 %v701_v4  ;;  %v710_v10 = vld [vmem:[%s840_s22 + $0x34] ss:$8 sps:$4 sm:$0xff]   ;;  %v712_v11 = vld [vmem:[%s840_s22 + $0x30] ss:$8 sps:$4 sm:$0xff]   ;;  %v713_v12 = vld [vmem:[%s840_s22 + $0x24] ss:$8 sps:$4 sm:$0xff]  }
  0x19   : > { %v715_v13 = vld [vmem:[%s840_s22 + $0x20] ss:$8 sps:$4 sm:$0xff]   ;;  %v716_v14 = vld [vmem:[%s840_s22 + $0x14] ss:$8 sps:$4 sm:$0xff]   ;;  %v718_v15 = vld [vmem:[%s840_s22 + $0x10] ss:$8 sps:$4 sm:$0xff]  }
  0x1a   : > { %v719_v16 = vld [vmem:[%s840_s22 + $0x4] ss:$8 sps:$4 sm:$0xff]   ;;  %v721_v17 = vld [vmem:[%s840_s22] ss:$8 sps:$4 sm:$0xff]   ;;  %v723_v19 = vld [vmem:[%s845_s26 + $0x38] sm:$0xff]   ;;  %v793_v20 = vmov 0.0  }
  0x1b   : > { %333 = vmatpush1.bf16.msra.mxu0 %v703_v5  ;;  %641 = vmatprep.subr.bf16.mxu1 %v793_v20  ;;  %v724_v21 = vld [vmem:[%s845_s26 + $0x30] sm:$0xff]   ;;  %v725_v22 = vld [vmem:[%s845_s26 + $0x28] sm:$0xff]   ;;  %v726_v23 = vld [vmem:[%s845_s26 + $0x20] sm:$0xff]   ;;  %vm794_vm0 = vmmov 0   ;;  %s795_s29 = smov [#allocation2]   ;;  %p876_p7 = scmp.eq.s32.totalorder %s590_s15, 2 }
  0x1c   : > { %334 = vmatprep.subr.bf16.mxu0 %v704_v6  ;;  %642 = vmatpush3.bf16.msra.mxu1 %v723_v19  ;;  %v727_v24 = vld [vmem:[%s845_s26 + $0x18] sm:$0xff]   ;;  %v728_v25 = vld [vmem:[%s845_s26 + $0x10] sm:$0xff]   ;;  %v729_v26 = vld [vmem:[%s845_s26 + $0x8] sm:$0xff]   ;;  %s510_s30 = sshll.u32 %s795_s29, 4  ;;  %s511_s30 = int_to_ptr.vmem [resolvable:$true] %s510_s30 }
  0x1d   : > { %643 = vmatprep.subr.bf16.mxu1 %v793_v20  ;;  %v730_v27 = vld [vmem:[%s845_s26] sm:$0xff]   ;;  %657 = vmatprep.mubr.msk.bf16.mxu1 %vm794_vm0, %v793_v20  ;;  %v390_v49 = vld [vmem:[#allocation2 + $0x8] sm:$0xff]  ;;  %s739_s5 = scalar_lea.vmem %s511_s30, 256  ;;  %p746_p11 = scmp.lt.s32.totalorder %s511_s30, %s511_s30 }
  0x1e   : > { %v389_v45 = vld [vmem:[#allocation2] sm:$0xff]  ;;  %p740_p8 = scmp.ne.s32.totalorder %s511_s30, %s739_s5  ;;  %p747_p12 = scmp.lt.s32.totalorder %s739_s5, %s739_s5 }
  0x1f   : > { %335 = vmatpush1.bf16.msra.mxu0 %v706_v7 }
  0x20   : > { %336 = vmatprep.subr.bf16.mxu0 %v707_v8  ;;  %644 = vmatpush3.bf16.msra.mxu1 %v724_v21  ;;  %p741_p9 = pnand %p740_p8, %p876_p7  ;;  %p748_p13 = por %p747_p12, %p746_p11 }
  0x21   : > { %645 = vmatprep.subr.bf16.mxu1 %v793_v20 }
  0x22   : > { %p742_p10 = pneg %p741_p9 }
  0x23   : > { %337 = vmatpush1.bf16.msra.mxu0 %v709_v9 }
  0x24   : > { %338 = vmatprep.subr.bf16.mxu0 %v710_v10  ;;  %646 = vmatpush3.bf16.msra.mxu1 %v725_v22  ;;  %p749_p0 = pnand %p748_p13, %p742_p10 }
  0x25   : > { %647 = vmatprep.subr.bf16.mxu1 %v793_v20 }
  0x27   : > { %339 = vmatpush1.bf16.msra.mxu0 %v712_v11 }
  0x28   : > { %340 = vmatprep.subr.bf16.mxu0 %v713_v12  ;;  %648 = vmatpush3.bf16.msra.mxu1 %v726_v23 }
  0x29   : > { %649 = vmatprep.subr.bf16.mxu1 %v793_v20 }
  0x2b   : > { %341 = vmatpush1.bf16.msra.mxu0 %v715_v13 }
  0x2c   : > { %342 = vmatprep.subr.bf16.mxu0 %v716_v14  ;;  %650 = vmatpush3.bf16.msra.mxu1 %v727_v24 }
  0x2d   : > { %651 = vmatprep.subr.bf16.mxu1 %v793_v20 }
  0x2f   : > { %343 = vmatpush1.bf16.msra.mxu0 %v718_v15 }
  0x30   : > { %344 = vmatprep.subr.bf16.mxu0 %v719_v16  ;;  %652 = vmatpush3.bf16.msra.mxu1 %v728_v25 }
  0x31   : > { %653 = vmatprep.subr.bf16.mxu1 %v793_v20 }
  0x33   : > { %345 = vmatpush1.bf16.msra.mxu0 %v721_v17 }
  0x34   : > { %654 = vmatpush3.bf16.msra.mxu1 %v729_v26 }
  0x35   : > { %655 = vmatprep.subr.bf16.mxu1 %v793_v20 }
  0x36   : > { %363 = vmatmul.mubr.bf16.vlgmr.msra.gmra.mxu0 %v722_v18 }
  0x38   : > { %656 = vmatpush3.bf16.msra.mxu1 %v730_v27 }
  0xf6   : > { %v364_v28 = vpop.f32.mrf.mxu0 }
  0xf7   : > { %v617_v29 = vmul.f32 -1.442695, %v364_v28 }
  0xf8   : > { %v366_v30 = vpop.f32.mrf.mxu0 }
  0xf9   : > { %731 = vpow2.f32 %v617_v29 }
  0xfa   : > { %v368_v31 = vpop.f32.mrf.mxu0 }
  0xfb   : > { %v618_v32 = vmul.f32 -1.442695, %v368_v31 }
  0xfc   : > { %v370_v41 = vpop.f32.mrf.mxu0 }
  0xfd   : > { %733 = vpow2.f32 %v618_v32 }
 0x106   : > { %v732_v33 = vpop.eup %731 }
 0x107   : > { %v379_v34 = vadd.f32 1.0, %v732_v33 }
 0x109   : > { %735 = vrcp.f32 %v379_v34 }
 0x10a   : > { %v734_v35 = vpop.eup %733 }
 0x10b   : > { %v380_v36 = vadd.f32 1.0, %v734_v35 }
 0x10d   : > { %737 = vrcp.f32 %v380_v36 }
 0x116   : > { %v736_v37 = vpop.eup %735 }
 0x117   : > { %v385_v38 = vmul.f32 %v736_v37, %v364_v28 }
 0x119   : > { %v387_v42 = vmul.f32 %v385_v38, %v366_v30 }
 0x11a   : > { %v738_v39 = vpop.eup %737 }
 0x11b   : > { %v386_v40 = vmul.f32 %v738_v39, %v368_v31 }
 0x11d   : > { %v388_v43 = vmul.f32 %v386_v40, %v370_v41 }
 0x11f   : > { %v391_v44 = vpack.c.bf16 %v388_v43, %v387_v42 }
 0x121   : > { %658 = vmatmul.mubr.bf16.vlgmr.msra.gmra.mxu1 %v391_v44 }
 0x1e1   : > { %v490_v46 = vpop.f32.mrf.mxu1 }
 0x1e2   : > { %v497_v47 = vadd.f32 %v490_v46, %v389_v45 }
 0x1e3   : > { %v659_v48 = vpop.f32.mrf.mxu1 }
 0x1e4   : > { %499 = vst [vmem:[#allocation2] sm:$0xff] %v497_v47 }
 0x1e5   : > { %v493_v50 = vpop.f32.mrf.mxu1 }
 0x1e6   : > { %v498_v51 = vadd.f32 %v493_v50, %v390_v49 }
 0x1e7   : > { %v660_v52 = vpop.f32.mrf.mxu1 }
 0x1e8   : > { %500 = vst [vmem:[#allocation2 + $0x8] sm:$0xff] %v498_v51 }
 0x1e9   : > { %752 = shalt.err (!%p749_p0)
}
 0x1ea   : > { %s796_s6 = smov 128   ;;  %s797_s7 = smov 8  }
 0x1eb   : > { %662 = dma.vmem_to_hbm [thread:$0]  (%p876_p7), %s511_s30, 256, %s903_s3, [#allocation3], %s796_s6, %s796_s6, %s797_s7  }
 0x1ec   : > { %776 = dma.done.wait (%p876_p7), [#allocation3], 256  }
 0x1ed   : > { %778 = vsyncadd (%p876_p7), [#allocation3], 4294967040 }
 0x1ee PF: > { %s14_s14 = sadd.s32 1, %s789_s14   ;;  %s905_s12 = smov %s785_s13 }
 0x1ef   : > { %p11_p1 = scmp.ge.s32.totalorder %s14_s14, 5   ;;  %s906_s13 = smov %s908_s16 }
 0x1f1   :  { %13 = sbr.rel (!%p11_p1) target bundleno = 2 (0x2), region = 70 }
 0x1f6   :  { %526 = vsyncpa [#allocation3], 1 }
 0x1f7   :  { %528 = vsyncpa [#allocation3 + $0x1], 1 }

</bundles_post_ra>
